<compile_context>
chip_gen: v5e
topology: v5e:2x2
jax: 0.10.0
libtpu: 0.0.40
codegen_flags: <defaults>
</compile_context>

<pallas_src>
import functools

import jax
import jax.numpy as jnp
from jax.experimental import pallas as pl
from jax.experimental.pallas import tpu as pltpu


def _round_up(x, m):
    return (x + m - 1) // m * m


def _mlp_kernel(x_ref, w1_ref, b1_ref, w2_ref, b2_ref, out_ref, *, n_actions):
    # fc1: (TB, D) @ (D, H) + (1, H) -> relu        (D unpadded, H = 128)
    h = jnp.dot(x_ref[...], w1_ref[...], preferred_element_type=jnp.float32)
    h = jnp.maximum(h + b1_ref[...], 0.0)
    # fc2: (TB, H) @ (H, Ap) + (1, Ap), lane-dense in-register (Ap = 128),
    # then store only the real n_actions columns (narrow HBM write).
    o = jnp.dot(h, w2_ref[...], preferred_element_type=jnp.float32)
    o = o + b2_ref[...]
    out_ref[...] = o[:, :n_actions].astype(out_ref.dtype)


def prepare_params(w1, b1, w2, b2):
    """One-time (hoisted) param prep: pad fc2's output dim to 128 lanes so the
    in-kernel second matmul is lane-dense. Call once, reuse every forward."""
    H, A = w2.shape
    Ap = _round_up(A, 128)
    w2p = jnp.pad(w2, ((0, 0), (0, Ap - A)))
    b2p = jnp.pad(b2, ((0, 0), (0, Ap - A)))
    return {"w1": w1, "b1": b1, "w2p": w2p, "b2p": b2p, "n_actions": A}


def _choose_batch_tiling(B, block_b):
    """Balanced, 8-aligned batch tiles; >=2 tiles when B >= 16 (v7x megacore)."""
    block_b = max(8, _round_up(block_b, 8))
    n_tiles = pl.cdiv(B, block_b)
    if B >= 16 and n_tiles < 2:
        n_tiles = 2
    TB = _round_up(pl.cdiv(B, n_tiles), 8)
    Bp = n_tiles * TB
    return TB, Bp, n_tiles


def linear_classifier_forward(x, params, *, block_b=1024):
    """Fused fc1 -> relu -> fc2.

    x      : (B, D) float32
    params : dict from prepare_params (padded fc2 weights cached there)
    returns (B, n_actions) float32
    """
    B, D = x.shape
    w1, b1 = params["w1"], params["b1"]
    w2p, b2p = params["w2p"], params["b2p"]
    A = params["n_actions"]
    H = w1.shape[1]
    Ap = w2p.shape[1]

    TB, Bp, n_tiles = _choose_batch_tiling(B, block_b)

    # Only pad the batch axis, and only when needed (exact: rows sliced off).
    xp = x if Bp == B else jnp.pad(x, ((0, Bp - B), (0, 0)))

    kernel = functools.partial(_mlp_kernel, n_actions=A)

    out = pl.pallas_call(
        kernel,
        out_shape=jax.ShapeDtypeStruct((Bp, A), jnp.float32),
        grid=(n_tiles,),
        in_specs=[
            pl.BlockSpec((TB, D), lambda i: (i, 0)),   # x tile, unpadded D
            pl.BlockSpec((D, H), lambda i: (0, 0)),    # w1, VMEM-resident
            pl.BlockSpec((1, H), lambda i: (0, 0)),    # b1, VMEM-resident
            pl.BlockSpec((H, Ap), lambda i: (0, 0)),   # w2 (lane-padded), resident
            pl.BlockSpec((1, Ap), lambda i: (0, 0)),   # b2 (lane-padded), resident
        ],
        out_specs=pl.BlockSpec((TB, A), lambda i: (i, 0)),  # narrow output store
        compiler_params=pltpu.CompilerParams(
            # Independent batch tiles -> parallel (lets v7x use both TCs).
            dimension_semantics=("parallel",)
        ),
    )(xp, w1, b1, w2p, b2p)

    return out if Bp == B else out[:B]


def init_params(key, input_dims, n_actions, hidden=128):
    """Deterministic init mirroring nn.Linear's default:
    U(-1/sqrt(fan_in), 1/sqrt(fan_in)) for weights and biases."""
    k1, k2, k3, k4 = jax.random.split(key, 4)
    bound1 = 1.0 / jnp.sqrt(jnp.float32(input_dims))
    bound2 = 1.0 / jnp.sqrt(jnp.float32(hidden))
    # Stored pre-transposed: (in, out)
    w1 = jax.random.uniform(k1, (input_dims, hidden), jnp.float32, -bound1, bound1)
    b1 = jax.random.uniform(k2, (1, hidden), jnp.float32, -bound1, bound1)
    w2 = jax.random.uniform(k3, (hidden, n_actions), jnp.float32, -bound2, bound2)
    b2 = jax.random.uniform(k4, (1, n_actions), jnp.float32, -bound2, bound2)
    return w1, b1, w2, b2

# TODO(synk): .learn() (Adam + MSE backward) and to_tensor/make_input_one_hot are
# training/host utilities with no forward-kernel equivalent; not implemented here.


if __name__ == "__main__":
    key = jax.random.PRNGKey(0)
    kx, kp, kx2 = jax.random.split(key, 3)

    batch = 8
    input_dims = 32     # *input_dims of the module
    n_actions = 4
    hidden = 128

    x = jax.random.normal(kx, (batch, input_dims), jnp.float32)
    w1, b1, w2, b2 = init_params(kp, input_dims, n_actions, hidden)

    # Padding of fc2 weights is done ONCE here, outside the per-call path.
    params = prepare_params(w1, b1, w2, b2)

    out = linear_classifier_forward(x, params)
    out = jax.block_until_ready(out)

    # Pure-JAX reference check of the fused kernel.
    ref = jnp.maximum(x @ w1 + b1, 0.0) @ w2 + b2
    assert out.shape == (batch, n_actions)
    assert jnp.allclose(out, ref, atol=1e-5, rtol=1e-5)

    # Exercise the multi-tile path with batch padding: B=20, block_b=8 ->
    # 3 balanced 8-row tiles, batch padded 20 -> 24 and sliced back.
    x2 = jax.random.normal(kx2, (20, input_dims), jnp.float32)
    out2 = jax.block_until_ready(
        linear_classifier_forward(x2, params, block_b=8))
    ref2 = jnp.maximum(x2 @ w1 + b1, 0.0) @ w2 + b2
    assert out2.shape == (20, n_actions)
    assert jnp.allclose(out2, ref2, atol=1e-5, rtol=1e-5)

    # Exercise the ">=2 tiles for v7x" path: B=64 fits one tile but is split
    # into two balanced 32-row tiles so both TensorCores get work.
    x3 = jax.random.normal(kp, (64, input_dims), jnp.float32)
    out3 = jax.block_until_ready(linear_classifier_forward(x3, params))
    ref3 = jnp.maximum(x3 @ w1 + b1, 0.0) @ w2 + b2
    assert out3.shape == (64, n_actions)
    assert jnp.allclose(out3, ref3, atol=1e-5, rtol=1e-5)

    print("KERNEL_OK")
</pallas_src>

<mosaic_0001>
module attributes {stable_mosaic.version = 11 : i64} {
  func.func @_mlp_kernel(%arg0: i32, %arg1: memref<8x32xf32, #tpu.memory_space<vmem>>, %arg2: memref<32x128xf32, #tpu.memory_space<vmem>>, %arg3: memref<1x128xf32, #tpu.memory_space<vmem>>, %arg4: memref<128x128xf32, #tpu.memory_space<vmem>>, %arg5: memref<1x128xf32, #tpu.memory_space<vmem>>, %arg6: memref<8x4xf32, #tpu.memory_space<vmem>>) attributes {dimension_semantics = [#tpu.dimension_semantics<parallel>], iteration_bounds = array<i64: 1>, scalar_prefetch = 0 : i64, scratch_operands = 0 : i64, tpu.core_type = #tpu.core_type<tc>, window_params = [{transform_indices = @transform_0, window_bounds = array<i64: 8, 32>}, {pipeline_mode = #tpu.pipeline_mode<synchronous>, transform_indices = @transform_1, window_bounds = array<i64: 32, 128>}, {pipeline_mode = #tpu.pipeline_mode<synchronous>, transform_indices = @transform_2, window_bounds = array<i64: 1, 128>}, {pipeline_mode = #tpu.pipeline_mode<synchronous>, transform_indices = @transform_3, window_bounds = array<i64: 128, 128>}, {pipeline_mode = #tpu.pipeline_mode<synchronous>, transform_indices = @transform_4, window_bounds = array<i64: 1, 128>}, {transform_indices = @transform_5, window_bounds = array<i64: 8, 4>}]} {
    %c0 = arith.constant 0 : index
    %c0_0 = arith.constant 0 : index
    %0 = vector.load %arg1[%c0, %c0_0] : memref<8x32xf32, #tpu.memory_space<vmem>>, vector<8x32xf32>
    %c0_1 = arith.constant 0 : index
    %c0_2 = arith.constant 0 : index
    %1 = vector.load %arg2[%c0_1, %c0_2] : memref<32x128xf32, #tpu.memory_space<vmem>>, vector<32x128xf32>
    %cst = arith.constant dense<0.000000e+00> : vector<8x128xf32>
    %2 = tpu.matmul %0, %1, %cst {dimension_numbers = #tpu.dot_dimension_numbers<[1], [0], [0], [1], [0, 0, 1, 1], [], []>} : vector<8x32xf32>, vector<32x128xf32>, vector<8x128xf32> -> vector<8x128xf32>
    %c0_3 = arith.constant 0 : index
    %c0_4 = arith.constant 0 : index
    %3 = vector.load %arg3[%c0_3, %c0_4] : memref<1x128xf32, #tpu.memory_space<vmem>>, vector<1x128xf32>
    %4 = vector.broadcast %3 : vector<1x128xf32> to vector<8x128xf32>
    %5 = arith.addf %2, %4 : vector<8x128xf32>
    %cst_5 = arith.constant 0.000000e+00 : f32
    %6 = vector.broadcast %cst_5 : f32 to vector<8x128xf32>
    %7 = arith.maximumf %5, %6 : vector<8x128xf32>
    %c0_6 = arith.constant 0 : index
    %c0_7 = arith.constant 0 : index
    %8 = vector.load %arg4[%c0_6, %c0_7] : memref<128x128xf32, #tpu.memory_space<vmem>>, vector<128x128xf32>
    %cst_8 = arith.constant dense<0.000000e+00> : vector<8x128xf32>
    %9 = tpu.matmul %7, %8, %cst_8 {dimension_numbers = #tpu.dot_dimension_numbers<[1], [0], [0], [1], [0, 0, 1, 1], [], []>} : vector<8x128xf32>, vector<128x128xf32>, vector<8x128xf32> -> vector<8x128xf32>
    %c0_9 = arith.constant 0 : index
    %c0_10 = arith.constant 0 : index
    %10 = vector.load %arg5[%c0_9, %c0_10] : memref<1x128xf32, #tpu.memory_space<vmem>>, vector<1x128xf32>
    %11 = vector.broadcast %10 : vector<1x128xf32> to vector<8x128xf32>
    %12 = arith.addf %9, %11 : vector<8x128xf32>
    %13 = vector.extract_strided_slice %12 {offsets = [0, 0], sizes = [8, 4], strides = [1, 1]} : vector<8x128xf32> to vector<8x4xf32>
    %c0_11 = arith.constant 0 : index
    %c0_12 = arith.constant 0 : index
    %14 = vector.load %arg6[%c0_11, %c0_12] : memref<8x4xf32, #tpu.memory_space<vmem>>, vector<8x4xf32>
    tpu.vector_store %arg6[%c0_11, %c0_12], %13 {strides = array<i32>} : memref<8x4xf32, #tpu.memory_space<vmem>>, vector<8x4xf32>,
    return
  }
  func.func @transform_0(%arg0: i32) -> (i32, i32) {
    %c0_i32 = arith.constant 0 : i32
    %c0_i32_0 = arith.constant 0 : i32
    return %arg0, %c0_i32 : i32, i32
  }
  func.func @transform_1(%arg0: i32) -> (i32, i32) {
    %c0_i32 = arith.constant 0 : i32
    %c0_i32_0 = arith.constant 0 : i32
    %c0_i32_1 = arith.constant 0 : i32
    return %c0_i32, %c0_i32_0 : i32, i32
  }
  func.func @transform_2(%arg0: i32) -> (i32, i32) {
    %c0_i32 = arith.constant 0 : i32
    %c0_i32_0 = arith.constant 0 : i32
    %c0_i32_1 = arith.constant 0 : i32
    return %c0_i32, %c0_i32_0 : i32, i32
  }
  func.func @transform_3(%arg0: i32) -> (i32, i32) {
    %c0_i32 = arith.constant 0 : i32
    %c0_i32_0 = arith.constant 0 : i32
    %c0_i32_1 = arith.constant 0 : i32
    return %c0_i32, %c0_i32_0 : i32, i32
  }
  func.func @transform_4(%arg0: i32) -> (i32, i32) {
    %c0_i32 = arith.constant 0 : i32
    %c0_i32_0 = arith.constant 0 : i32
    %c0_i32_1 = arith.constant 0 : i32
    return %c0_i32, %c0_i32_0 : i32, i32
  }
  func.func @transform_5(%arg0: i32) -> (i32, i32) {
    %c0_i32 = arith.constant 0 : i32
    %c0_i32_0 = arith.constant 0 : i32
    return %arg0, %c0_i32 : i32, i32
  }
}

</mosaic_0001>

<bundles_post_ra>
// kernel: tpu_custom_call.1
= control target key start
LH: loop header
LB: loop body
LE: loop exit
PB: predicated region body
PF: predicated region fallthrough
CT: control target
= control target key end

     0   :  { %10 = vsyncpa [#allocation3], 0  ;;  %s284_s0 = inlined_call_operand.hbm [shape: f32[8,32], index: 0, kind: input, shape index: {}]   ;;  %s285_s1 = inlined_call_operand.hbm [shape: f32[32,128], index: 1, kind: input, shape index: {}]   ;;  %s286_s2 = inlined_call_operand.vmem [shape: f32[1,128], index: 2, kind: input, shape index: {}]   ;;  %s287_s3 = inlined_call_operand.hbm [shape: f32[128,128], index: 3, kind: input, shape index: {}]   ;;  %s288_s4 = inlined_call_operand.vmem [shape: f32[1,128], index: 4, kind: input, shape index: {}]   ;;  %s289_s5 = inlined_call_operand.vmem [shape: f32[8,4], index: 5, kind: output, shape index: {}]  }
   0x1   :  { %11 = vsyncpa [#allocation5], 0  ;;  %s27_s20 = sshll.u32 %s285_s1, 4  ;;  %s231_s21 = smov [#allocation4]   ;;  %s28_s20 = int_to_ptr.hbm [resolvable:$true] %s27_s20 }
   0x2   :  { %s29_s22 = sshll.u32 %s231_s21, 4  ;;  %s17_s25 = sshll.u32 %s284_s0, 4  ;;  %s30_s22 = int_to_ptr.vmem [resolvable:$true] %s29_s22  ;;  %s18_s25 = int_to_ptr.hbm [resolvable:$true] %s17_s25 }
   0x3   :  { %s232_s26 = smov 128   ;;  %s233_s27 = smov 8  }
   0x4   :  { %35 = dma.hbm_to_vmem [thread:$0]  %s28_s20, 512, %s30_s22, [#allocation5], %s232_s26, %s232_s26, %s233_s27  }
   0x5   :  { %s234_s28 = smov [#allocation2]   ;;  %s42_s7 = sshll.u32 %s287_s3, 4  ;;  %s43_s7 = int_to_ptr.hbm [resolvable:$true] %s42_s7 }
   0x6   :  { %s19_s29 = sshll.u32 %s234_s28, 4  ;;  %s235_s1 = smov [#allocation6]   ;;  %s20_s29 = int_to_ptr.vmem [resolvable:$true] %s19_s29 }
   0x7   :  { %22 = dma.hbm_to_vmem [thread:$0]  %s18_s25, 128, %s20_s29, [#allocation3]  }
   0x8   :  { %s44_s8 = sshll.u32 %s235_s1, 4  ;;  %s45_s8 = int_to_ptr.vmem [resolvable:$true] %s44_s8 }
   0x9   :  { %50 = dma.hbm_to_vmem [thread:$0]  %s43_s7, 2048, %s45_s8, [#allocation5], %s232_s26, %s232_s26, %s233_s27  }
   0xa   :  { %227 = dma.done.wait [#allocation3], 128  }
   0xb   :  { %228 = vsyncadd [#allocation3], 4294967168 }
   0xc   :  { %229 = dma.done.wait [#allocation5], 2560  }
   0xd   :  { %230 = vsyncadd [#allocation5], 4294964736  ;;  %v69_v0 = vld [vmem:[#allocation4 + $0x18] sm:$0xff]  ;;  %v68_v1 = vld [vmem:[#allocation4 + $0x10] sm:$0xff]  ;;  %vm74_vm0 = vcmask 261120   ;;  %vm139_vm1 = vcmask 31744  }
   0xe   :  { %90 = vmatpush.msra.mxu0 %v69_v0  ;;  %v114_v2 = vld [vmem:[#allocation6 + $0x78] sm:$0xff]  ;;  %v67_v3 = vld [vmem:[#allocation4 + $0x8] sm:$0xff]  ;;  %v113_v4 = vld [vmem:[#allocation6 + $0x70] sm:$0xff] }
   0xf   :  { %119 = vmatpush.msra.mxu1 %v114_v2  ;;  %v112_v5 = vld [vmem:[#allocation6 + $0x68] sm:$0xff]  ;;  %v66_v6 = vld [vmem:[#allocation4] sm:$0xff]  ;;  %v65_v7 = vld [vmem:[#allocation2] sm:$0xff] }
  0x10   :  { %91 = vmatpush.msra.mxu0 %v68_v1  ;;  %v111_v8 = vld [vmem:[#allocation6 + $0x60] sm:$0xff]  ;;  %v110_v9 = vld [vmem:[#allocation6 + $0x58] sm:$0xff]  ;;  %v109_v10 = vld [vmem:[#allocation6 + $0x50] sm:$0xff] }
  0x11   :  { %120 = vmatpush.msra.mxu1 %v113_v4  ;;  %v108_v11 = vld [vmem:[#allocation6 + $0x48] sm:$0xff]  ;;  %v107_v12 = vld [vmem:[#allocation6 + $0x40] sm:$0xff]  ;;  %v106_v13 = vld [vmem:[#allocation6 + $0x38] sm:$0xff] }
  0x12   :  { %92 = vmatpush.msra.mxu0 %v67_v3  ;;  %v105_v14 = vld [vmem:[#allocation6 + $0x30] sm:$0xff]  ;;  %v104_v15 = vld [vmem:[#allocation6 + $0x28] sm:$0xff]  ;;  %v103_v16 = vld [vmem:[#allocation6 + $0x20] sm:$0xff] }
  0x13   :  { %121 = vmatpush.msra.mxu1 %v112_v5  ;;  %v102_v17 = vld [vmem:[#allocation6 + $0x18] sm:$0xff]  ;;  %v101_v18 = vld [vmem:[#allocation6 + $0x10] sm:$0xff]  ;;  %v100_v19 = vld [vmem:[#allocation6 + $0x8] sm:$0xff] }
  0x14   :  { %93 = vmatpush.msra.mxu0 %v66_v6  ;;  %v99_v20 = vld [vmem:[#allocation6] sm:$0xff]  ;;  %v153_v21 = vld [vmem:[%s286_s2] ss:$0 sm:$0xff] }
  0x15   :  { %147 = vmatmul.msk.f32.vlgmr.msra.gmra.mxu0 %vm74_vm0, %v65_v7  ;;  %122 = vmatpush.msra.mxu1 %v111_v8  ;;  %v154_v25 = vld [vmem:[%s288_s4] ss:$0 sm:$0xff] }
  0x17   :  { %123 = vmatpush.msra.mxu1 %v110_v9 }
  0x19   :  { %124 = vmatpush.msra.mxu1 %v109_v10 }
  0x1b   :  { %125 = vmatpush.msra.mxu1 %v108_v11 }
  0x1d   :  { %126 = vmatpush.msra.mxu1 %v107_v12 }
  0x1f   :  { %127 = vmatpush.msra.mxu1 %v106_v13 }
  0x21   :  { %128 = vmatpush.msra.mxu1 %v105_v14 }
  0x23   :  { %129 = vmatpush.msra.mxu1 %v104_v15 }
  0x25   :  { %130 = vmatpush.msra.mxu1 %v103_v16 }
  0x27   :  { %131 = vmatpush.msra.mxu1 %v102_v17 }
  0x29   :  { %132 = vmatpush.msra.mxu1 %v101_v18 }
  0x2b   :  { %133 = vmatpush.msra.mxu1 %v100_v19 }
  0x2d   :  { %134 = vmatpush.msra.mxu1 %v99_v20 }
  0x92   :  { %v95_v22 = vpop.f32.mrf.mxu0 }
  0x93   :  { %v96_v23 = vadd.f32 %v153_v21, %v95_v22 }
  0x95   :  { %v98_v24 = vmax.f32 %v96_v23, 0.0 }
  0x97   :  { %135 = vmatmul.f32.vlgmr.msra.gmra.mxu1 %v98_v24 }
 0x114   :  { %v136_v26 = vpop.f32.mrf.mxu1 }
 0x115   :  { %v137_v27 = vadd.f32 %v154_v25, %v136_v26 }
 0x117   :  { %140 = vst.msk [vmem:[%s289_s5] sm:$0xff] %vm139_vm1, %v137_v27 }
 0x118   :  { %145 = vsyncpa [#allocation3], 1 }
 0x119   :  { %146 = vsyncpa [#allocation5], 1 }

</bundles_post_ra>
